<compile_context>
chip_gen: v7x
topology: tpu7x:2x2x1
jax: 0.10.0
libtpu: 0.0.40
codegen_flags: <defaults>
</compile_context>

<pallas_src>
import jax
import jax.numpy as jnp
from jax import lax
from jax.experimental import pallas as pl
from jax.experimental.pallas import tpu as pltpu


def _round_up(x, m):
    return (x + m - 1) // m * m


def weight_network_kernel(x_ref, cw_ref, sh_ref, w1_ref, b1_ref, w2_ref, b2_ref, o_ref):
    # x_ref : (TB, C*HW)    VMEM (bf16 or f32)   one batch tile, channels flattened on lanes
    # cw_ref: (C,)          SMEM f32             conv weights folded with BN scale
    # sh_ref: (1, 1)        SMEM f32             conv bias folded with BN scale/shift
    # w1_ref: (HW, HID_PAD) VMEM f32             fc1 weight, pre-transposed, hidden padded to 128
    # b1_ref: (1, HID_PAD)  VMEM f32
    # w2_ref: (1, HID_PAD)  VMEM f32             fc2 weight row, hidden padded with zeros
    # b2_ref: (1, 1)        SMEM f32
    # o_ref : (1, TB)       VMEM f32             lane-dense output row for this batch tile
    C = cw_ref.shape[0]
    HW = w1_ref.shape[0]

    # 1x1 conv (single output channel): unrolled multiply-add over channels with scalar
    # weights from SMEM.  Stays entirely in VPU slots; upcast bf16 -> f32 per slice.
    acc = x_ref[:, 0:HW].astype(jnp.float32) * cw_ref[0]
    for c in range(1, C):  # C is small & static; use lax.fori_loop + pl.ds for large C
        acc = acc + x_ref[:, c * HW:(c + 1) * HW].astype(jnp.float32) * cw_ref[c]

    # conv bias + BatchNorm2d (eval) already folded into cw/sh; ReLU.
    y = jnp.maximum(acc + sh_ref[0, 0], 0.0)                       # (TB, HW) f32

    # fc1 + ReLU on the MXU (hidden dim lane-dense thanks to zero padding).
    h = jnp.dot(y, w1_ref[...], preferred_element_type=jnp.float32) + b1_ref[...]
    h = jnp.maximum(h, 0.0)                                        # (TB, HID_PAD)

    # fc2: contract the hidden dim of h against the w2 row -> (1, TB) lane-dense output.
    o = lax.dot_general(w2_ref[...], h,
                        dimension_numbers=(((1,), (1,)), ((), ())),
                        preferred_element_type=jnp.float32)        # (1, TB)
    o_ref[...] = jax.nn.sigmoid(o + b2_ref[0, 0])


def weight_network_forward(x_nchw, params, *, block_b=512, x_dtype=jnp.bfloat16):
    """x_nchw: (B, C, H, W) float32.  Returns (B, 1) float32."""
    B, C, H, W = x_nchw.shape
    HW = H * W
    HID = params["fc1_w"].shape[0]
    HID_PAD = _round_up(HID, 128)

    # --- Fold eval-mode BatchNorm + conv bias into the conv weights / one shift. ---
    eps = 1e-5
    scale = params["bn_gamma"][0] / jnp.sqrt(params["bn_var"][0] + eps)
    shift = params["bn_beta"][0] - scale * params["bn_mean"][0]
    cw = (params["conv_w"].reshape(C).astype(jnp.float32) * scale)          # (C,)
    sh = (params["conv_b"][0] * scale + shift).reshape(1, 1).astype(jnp.float32)

    # --- fc weights: pre-transpose, zero-pad hidden dim to a full 128-lane width. ---
    w1t = jnp.zeros((HW, HID_PAD), jnp.float32).at[:, :HID].set(params["fc1_w"].T)
    b1 = jnp.zeros((1, HID_PAD), jnp.float32).at[:, :HID].set(params["fc1_b"])
    w2r = jnp.zeros((1, HID_PAD), jnp.float32).at[:, :HID].set(params["fc2_w"].reshape(1, HID))
    b2 = params["fc2_b"].reshape(1, 1).astype(jnp.float32)

    # --- Batch tiling: double-buffered x tiles, sized for a ~4 MiB/buffer VMEM budget
    #     (fits v5e/v6e 128 MiB and v7x 64 MiB with the default scoped limit). ---
    bytes_per_row = C * HW * jnp.dtype(x_dtype).itemsize
    tb_budget = max(8, (4 * 1024 * 1024 // int(bytes_per_row)) // 8 * 8)
    TB = min(block_b, tb_budget)
    if B <= TB:
        TB = _round_up(B, 8)                    # single tile: block dims == array dims
    else:
        TB = max(128, (TB // 128) * 128)        # multiple tiles: keep blocks lane-aligned
    B_pad = _round_up(B, TB)
    nt = B_pad // TB

    # Flatten channels+spatial onto the lane axis (contiguous reshape, no data movement)
    # and cast to bf16 to halve HBM->VMEM DMA bytes.  All math runs in f32 in-kernel.
    x2 = x_nchw.reshape(B, C * HW).astype(x_dtype)
    if B_pad != B:
        x2 = jnp.pad(x2, ((0, B_pad - B), (0, 0)))

    out = pl.pallas_call(
        weight_network_kernel,
        out_shape=jax.ShapeDtypeStruct((1, B_pad), jnp.float32),
        grid_spec=pltpu.PrefetchScalarGridSpec(
            num_scalar_prefetch=0,
            grid=(nt,),
            in_specs=[
                pl.BlockSpec((TB, C * HW), lambda i: (i, 0)),              # x tile (pipelined)
                pl.BlockSpec(memory_space=pltpu.MemorySpace.SMEM),         # folded conv weights
                pl.BlockSpec(memory_space=pltpu.MemorySpace.SMEM),         # folded shift
                pl.BlockSpec((HW, HID_PAD), lambda i: (0, 0)),             # w1t (resident)
                pl.BlockSpec((1, HID_PAD), lambda i: (0, 0)),              # b1  (resident)
                pl.BlockSpec((1, HID_PAD), lambda i: (0, 0)),              # w2 row (resident)
                pl.BlockSpec(memory_space=pltpu.MemorySpace.SMEM),         # b2
            ],
            out_specs=pl.BlockSpec((1, TB), lambda i: (0, i)),             # lane-dense output
        ),
        compiler_params=pltpu.CompilerParams(
            dimension_semantics=("parallel",)),  # shard batch tiles across TCs (v7x megacore)
    )(x2, cw, sh, w1t, b1, w2r, b2)

    return out[0, :B].reshape(B, 1)


def init_params(key, num_channels, channel_height, channel_width, num_value_hidden_channels):
    HW = channel_height * channel_width
    k = jax.random.split(key, 6)
    params = {
        # nn.Conv2d(num_channels, 1, kernel_size=1): weight (1, C, 1, 1), bias (1,)
        "conv_w": 0.1 * jax.random.normal(k[0], (num_channels,), jnp.float32),
        "conv_b": 0.1 * jax.random.normal(k[1], (1,), jnp.float32),
        # nn.BatchNorm2d(1) defaults (eval mode)
        "bn_gamma": jnp.ones((1,), jnp.float32),
        "bn_beta": jnp.zeros((1,), jnp.float32),
        "bn_mean": jnp.zeros((1,), jnp.float32),
        "bn_var": jnp.ones((1,), jnp.float32),
        # nn.Linear(HW, hidden): weight (hidden, HW), bias (hidden,)
        "fc1_w": 0.05 * jax.random.normal(k[2], (num_value_hidden_channels, HW), jnp.float32),
        "fc1_b": 0.05 * jax.random.normal(k[3], (num_value_hidden_channels,), jnp.float32),
        # nn.Linear(hidden, 1)
        "fc2_w": 0.05 * jax.random.normal(k[4], (1, num_value_hidden_channels), jnp.float32),
        "fc2_b": 0.05 * jax.random.normal(k[5], (1,), jnp.float32),
    }
    return params


def reference_forward(x_nchw, params):
    """Pure-JAX reference matching the PyTorch forward (BN in eval mode)."""
    B, C, H, W = x_nchw.shape
    eps = 1e-5
    conv = jnp.einsum("bchw,c->bhw", x_nchw, params["conv_w"]) + params["conv_b"][0]
    bn = (conv - params["bn_mean"][0]) / jnp.sqrt(params["bn_var"][0] + eps)
    bn = bn * params["bn_gamma"][0] + params["bn_beta"][0]
    y = jnp.maximum(bn, 0.0).reshape(B, H * W)
    h = jnp.maximum(y @ params["fc1_w"].T + params["fc1_b"], 0.0)
    o = h @ params["fc2_w"].T + params["fc2_b"]
    return jax.nn.sigmoid(o)


if __name__ == "__main__":
    # Small shapes consistent with the module.
    B, C, H, W, HIDDEN = 2, 4, 16, 16, 32

    key = jax.random.PRNGKey(0)
    kx, kp = jax.random.split(key)
    x = jax.random.normal(kx, (B, C, H, W), jnp.float32)
    params = init_params(kp, C, H, W, HIDDEN)

    fwd = jax.jit(weight_network_forward)
    out = jax.block_until_ready(fwd(x, params))

    # Reference computed on the same bf16-quantized input (the input cast is the only
    # approximation the kernel makes; all in-kernel math is f32).
    x_q = x.astype(jnp.bfloat16).astype(jnp.float32)
    ref = reference_forward(x_q, params)

    assert out.shape == (B, 1), out.shape
    assert jnp.allclose(out, ref, atol=5e-3, rtol=5e-3), (out, ref)
    print("KERNEL_OK")
</pallas_src>

<mosaic_0001>
module attributes {stable_mosaic.version = 11 : i64} {
  func.func @weight_network_kernel(%arg0: i32, %arg1: memref<8x1024xbf16, #tpu.memory_space<vmem>>, %arg2: memref<4xf32, #tpu.memory_space<smem>>, %arg3: memref<1x1xf32, #tpu.memory_space<smem>>, %arg4: memref<256x128xf32, #tpu.memory_space<vmem>>, %arg5: memref<1x128xf32, #tpu.memory_space<vmem>>, %arg6: memref<1x128xf32, #tpu.memory_space<vmem>>, %arg7: memref<1x1xf32, #tpu.memory_space<smem>>, %arg8: memref<1x8xf32, #tpu.memory_space<vmem>>) attributes {dimension_semantics = [#tpu.dimension_semantics<parallel>], iteration_bounds = array<i64: 1>, scalar_prefetch = 0 : i64, scratch_operands = 0 : i64, tpu.core_type = #tpu.core_type<tc>, window_params = [{transform_indices = @transform_0, window_bounds = array<i64: 8, 1024>}, {transform_indices = @transform_1, window_bounds = array<i64: 4>}, {transform_indices = @transform_2, window_bounds = array<i64: 1, 1>}, {pipeline_mode = #tpu.pipeline_mode<synchronous>, transform_indices = @transform_3, window_bounds = array<i64: 256, 128>}, {pipeline_mode = #tpu.pipeline_mode<synchronous>, transform_indices = @transform_4, window_bounds = array<i64: 1, 128>}, {pipeline_mode = #tpu.pipeline_mode<synchronous>, transform_indices = @transform_5, window_bounds = array<i64: 1, 128>}, {transform_indices = @transform_6, window_bounds = array<i64: 1, 1>}, {transform_indices = @transform_7, window_bounds = array<i64: 1, 8>}]} {
    %c0 = arith.constant 0 : index
    %c0_0 = arith.constant 0 : index
    %0 = vector.load %arg1[%c0, %c0_0] : memref<8x1024xbf16, #tpu.memory_space<vmem>>, vector<8x256xbf16>
    %1 = arith.extf %0 : vector<8x256xbf16> to vector<8x256xf32>
    %c0_1 = arith.constant 0 : index
    %2 = memref.load %arg2[%c0_1] : memref<4xf32, #tpu.memory_space<smem>>
    %3 = vector.broadcast %2 : f32 to vector<8x256xf32>
    %4 = arith.mulf %1, %3 : vector<8x256xf32>
    %c0_2 = arith.constant 0 : index
    %c256 = arith.constant 256 : index
    %5 = vector.load %arg1[%c0_2, %c256] : memref<8x1024xbf16, #tpu.memory_space<vmem>>, vector<8x256xbf16>
    %6 = arith.extf %5 : vector<8x256xbf16> to vector<8x256xf32>
    %c1 = arith.constant 1 : index
    %7 = memref.load %arg2[%c1] : memref<4xf32, #tpu.memory_space<smem>>
    %8 = vector.broadcast %7 : f32 to vector<8x256xf32>
    %9 = arith.mulf %6, %8 : vector<8x256xf32>
    %10 = arith.addf %4, %9 : vector<8x256xf32>
    %c0_3 = arith.constant 0 : index
    %c512 = arith.constant 512 : index
    %11 = vector.load %arg1[%c0_3, %c512] : memref<8x1024xbf16, #tpu.memory_space<vmem>>, vector<8x256xbf16>
    %12 = arith.extf %11 : vector<8x256xbf16> to vector<8x256xf32>
    %c2 = arith.constant 2 : index
    %13 = memref.load %arg2[%c2] : memref<4xf32, #tpu.memory_space<smem>>
    %14 = vector.broadcast %13 : f32 to vector<8x256xf32>
    %15 = arith.mulf %12, %14 : vector<8x256xf32>
    %16 = arith.addf %10, %15 : vector<8x256xf32>
    %c0_4 = arith.constant 0 : index
    %c768 = arith.constant 768 : index
    %17 = vector.load %arg1[%c0_4, %c768] : memref<8x1024xbf16, #tpu.memory_space<vmem>>, vector<8x256xbf16>
    %18 = arith.extf %17 : vector<8x256xbf16> to vector<8x256xf32>
    %c3 = arith.constant 3 : index
    %19 = memref.load %arg2[%c3] : memref<4xf32, #tpu.memory_space<smem>>
    %20 = vector.broadcast %19 : f32 to vector<8x256xf32>
    %21 = arith.mulf %18, %20 : vector<8x256xf32>
    %22 = arith.addf %16, %21 : vector<8x256xf32>
    %c0_5 = arith.constant 0 : index
    %c0_6 = arith.constant 0 : index
    %23 = memref.load %arg3[%c0_5, %c0_6] : memref<1x1xf32, #tpu.memory_space<smem>>
    %24 = vector.broadcast %23 : f32 to vector<8x256xf32>
    %25 = arith.addf %22, %24 : vector<8x256xf32>
    %cst = arith.constant 0.000000e+00 : f32
    %26 = vector.broadcast %cst : f32 to vector<8x256xf32>
    %27 = arith.maximumf %25, %26 : vector<8x256xf32>
    %c0_7 = arith.constant 0 : index
    %c0_8 = arith.constant 0 : index
    %28 = vector.load %arg4[%c0_7, %c0_8] : memref<256x128xf32, #tpu.memory_space<vmem>>, vector<256x128xf32>
    %cst_9 = arith.constant dense<0.000000e+00> : vector<8x128xf32>
    %29 = tpu.matmul %27, %28, %cst_9 {dimension_numbers = #tpu.dot_dimension_numbers<[1], [0], [0], [1], [0, 0, 1, 1], [], []>} : vector<8x256xf32>, vector<256x128xf32>, vector<8x128xf32> -> vector<8x128xf32>
    %c0_10 = arith.constant 0 : index
    %c0_11 = arith.constant 0 : index
    %30 = vector.load %arg5[%c0_10, %c0_11] : memref<1x128xf32, #tpu.memory_space<vmem>>, vector<1x128xf32>
    %31 = vector.broadcast %30 : vector<1x128xf32> to vector<8x128xf32>
    %32 = arith.addf %29, %31 : vector<8x128xf32>
    %cst_12 = arith.constant 0.000000e+00 : f32
    %33 = vector.broadcast %cst_12 : f32 to vector<8x128xf32>
    %34 = arith.maximumf %32, %33 : vector<8x128xf32>
    %c0_13 = arith.constant 0 : index
    %c0_14 = arith.constant 0 : index
    %35 = vector.load %arg6[%c0_13, %c0_14] : memref<1x128xf32, #tpu.memory_space<vmem>>, vector<1x128xf32>
    %cst_15 = arith.constant dense<0.000000e+00> : vector<1x8xf32>
    %36 = tpu.matmul %35, %34, %cst_15 {dimension_numbers = #tpu.dot_dimension_numbers<[1], [1], [0], [0], [0, 0, 1, 0], [], []>} : vector<1x128xf32>, vector<8x128xf32>, vector<1x8xf32> -> vector<1x8xf32>
    %c0_16 = arith.constant 0 : index
    %c0_17 = arith.constant 0 : index
    %37 = memref.load %arg7[%c0_16, %c0_17] : memref<1x1xf32, #tpu.memory_space<smem>>
    %38 = vector.broadcast %37 : f32 to vector<1x8xf32>
    %39 = arith.addf %36, %38 : vector<1x8xf32>
    %40 = arith.negf %39 : vector<1x8xf32>
    %41 = math.exp %40 : vector<1x8xf32>
    %cst_18 = arith.constant 1.000000e+00 : f32
    %42 = vector.broadcast %cst_18 : f32 to vector<1x8xf32>
    %43 = arith.addf %42, %41 : vector<1x8xf32>
    %44 = arith.divf %42, %43 : vector<1x8xf32>
    %c0_19 = arith.constant 0 : index
    %c0_20 = arith.constant 0 : index
    %45 = vector.load %arg8[%c0_19, %c0_20] : memref<1x8xf32, #tpu.memory_space<vmem>>, vector<1x8xf32>
    tpu.vector_store %arg8[%c0_19, %c0_20], %44 {strides = array<i32>} : memref<1x8xf32, #tpu.memory_space<vmem>>, vector<1x8xf32>,
    return
  }
  func.func @transform_0(%arg0: i32) -> (i32, i32) {
    %c0_i32 = arith.constant 0 : i32
    %c0_i32_0 = arith.constant 0 : i32
    return %arg0, %c0_i32 : i32, i32
  }
  func.func @transform_1(%arg0: i32) -> i32 {
    %c0_i32 = arith.constant 0 : i32
    %c0_i32_0 = arith.constant 0 : i32
    return %c0_i32 : i32
  }
  func.func @transform_2(%arg0: i32) -> (i32, i32) {
    %c0_i32 = arith.constant 0 : i32
    %c0_i32_0 = arith.constant 0 : i32
    %c0_i32_1 = arith.constant 0 : i32
    return %c0_i32, %c0_i32_0 : i32, i32
  }
  func.func @transform_3(%arg0: i32) -> (i32, i32) {
    %c0_i32 = arith.constant 0 : i32
    %c0_i32_0 = arith.constant 0 : i32
    %c0_i32_1 = arith.constant 0 : i32
    return %c0_i32, %c0_i32_0 : i32, i32
  }
  func.func @transform_4(%arg0: i32) -> (i32, i32) {
    %c0_i32 = arith.constant 0 : i32
    %c0_i32_0 = arith.constant 0 : i32
    %c0_i32_1 = arith.constant 0 : i32
    return %c0_i32, %c0_i32_0 : i32, i32
  }
  func.func @transform_5(%arg0: i32) -> (i32, i32) {
    %c0_i32 = arith.constant 0 : i32
    %c0_i32_0 = arith.constant 0 : i32
    %c0_i32_1 = arith.constant 0 : i32
    return %c0_i32, %c0_i32_0 : i32, i32
  }
  func.func @transform_6(%arg0: i32) -> (i32, i32) {
    %c0_i32 = arith.constant 0 : i32
    %c0_i32_0 = arith.constant 0 : i32
    %c0_i32_1 = arith.constant 0 : i32
    return %c0_i32, %c0_i32_0 : i32, i32
  }
  func.func @transform_7(%arg0: i32) -> (i32, i32) {
    %c0_i32 = arith.constant 0 : i32
    %c0_i32_0 = arith.constant 0 : i32
    return %c0_i32, %arg0 : i32, i32
  }
}

</mosaic_0001>

<bundles_post_ra>
// kernel: weight_network_forward.1
= control target key start
LH: loop header
LB: loop body
LE: loop exit
PB: predicated region body
PF: predicated region fallthrough
CT: control target
= control target key end

     0   :  { %14 = vsyncpa [#allocation5], 0  ;;  %s558_s0 = inlined_call_operand.vmem [shape: bf16[8,1024], index: 0, kind: input, shape index: {}]   ;;  %s559_s1 = inlined_call_operand.vmem [shape: f32[4], index: 1, kind: input, shape index: {}]   ;;  %s560_s2 = inlined_call_operand.<no memory space> [shape: f32[1,1], index: 2, kind: input, shape index: {}]   ;;  %s561_s3 = inlined_call_operand.vmem [shape: f32[256,128], index: 3, kind: input, shape index: {}]   ;;  %s562_s4 = inlined_call_operand.vmem [shape: f32[1,128], index: 4, kind: input, shape index: {}]   ;;  %s563_s5 = inlined_call_operand.vmem [shape: f32[1,128], index: 5, kind: input, shape index: {}]   ;;  %s564_s6 = inlined_call_operand.<no memory space> [shape: f32[1,1], index: 6, kind: input, shape index: {}]   ;;  %s565_s7 = inlined_call_operand.vmem [shape: f32[1,8], index: 7, kind: output, shape index: {}]  }
   0x1   :  { %s23_s26 = sshll.u32 %s559_s1, 4  ;;  %s24_s26 = int_to_ptr.vmem [resolvable:$true] %s23_s26 }
   0x2   :  { %s363_s27 = scalar_lea.vmem %s24_s26, 16  ;;  %p368_p1 = scmp.lt.s32.totalorder %s24_s26, %s24_s26 }
   0x3   :  { %p364_p0 = scmp.ne.s32.totalorder %s24_s26, %s363_s27  ;;  %p369_p2 = scmp.lt.s32.totalorder %s363_s27, %s363_s27 }
   0x5   :  { %p370_p3 = por %p369_p2, %p368_p1 }
   0x7   :  { %p371_p4 = pnand %p370_p3, %p364_p0 }
   0x9   :  { %374 = shalt.err (!%p371_p4)
}
   0xa   :  { %s377_s28 = smov [#allocation4]  }
   0xb   :  { %26 = dma.vmem_to_smem %s24_s26, 16, %s377_s28, [#allocation5]  }
   0xc   :  { %375 = dma.done.wait [#allocation5], 16  }
   0xd   :  { %376 = vsyncadd [#allocation5], 4294967280 }
   0xe   :  { %40 = sfence }
   0xf   :  { %v97_v0 = vld [vmem:[%s561_s3 + $0x80] sm:$0xff]  ;;  %v98_v1 = vld [vmem:[%s561_s3 + $0x88] sm:$0xff]  ;;  %v99_v5 = vld [vmem:[%s561_s3 + $0x90] sm:$0xff]  ;;  %s441_s17 = sld [smem:[#allocation4]]  ;;  %s452_s24 = sld [smem:[#allocation4 + $0x1]]  ;;  %vm379_vm0 = vmmov 0  }
  0x10   :  { %v81_v2 = vld [vmem:[%s561_s3] sm:$0xff]  ;;  %v324_v3 = vpack.c.bf16 %v98_v1, %v97_v0  ;;  %v82_v4 = vld [vmem:[%s561_s3 + $0x8] sm:$0xff]  ;;  %v100_v6 = vld [vmem:[%s561_s3 + $0x98] sm:$0xff]  ;;  %s457_s27 = sld [smem:[#allocation4 + $0x2]]  ;;  %s465_s9 = sld [smem:[#allocation4 + $0x3]]  ;;  %v76_v1 = vstv %s560_s2  ;;  %vm270_vm1 = vcmask 57344  }
  0x11   :  { %v326_v7 = vpack.c.bf16 %v82_v4, %v81_v2  ;;  %v328_v8 = vpack.c.bf16 %v100_v6, %v99_v5  ;;  %v83_v9 = vld [vmem:[%s561_s3 + $0x10] sm:$0xff]  ;;  %v84_v10 = vld [vmem:[%s561_s3 + $0x18] sm:$0xff]  ;;  %v101_v11 = vld [vmem:[%s561_s3 + $0xa0] sm:$0xff] }
  0x12   :  { %325 = vmatprep.subr.bf16.mxu0 %v324_v3  ;;  %v102_v12 = vld [vmem:[%s561_s3 + $0xa8] sm:$0xff]  ;;  %v330_v13 = vpack.c.bf16 %v84_v10, %v83_v9  ;;  %v85_v15 = vld [vmem:[%s561_s3 + $0x20] sm:$0xff]  ;;  %v103_v17 = vld [vmem:[%s561_s3 + $0xb0] sm:$0xff] }
  0x13   :  { %327 = vmatpush3.bf16.msra.mxu0 %v326_v7  ;;  %v332_v14 = vpack.c.bf16 %v102_v12, %v101_v11  ;;  %v86_v16 = vld [vmem:[%s561_s3 + $0x28] sm:$0xff]  ;;  %v104_v18 = vld [vmem:[%s561_s3 + $0xb8] sm:$0xff]  ;;  %v87_v19 = vld [vmem:[%s561_s3 + $0x30] sm:$0xff] }
  0x14   :  { %329 = vmatprep.subr.bf16.mxu0 %v328_v8  ;;  %v88_v20 = vld [vmem:[%s561_s3 + $0x38] sm:$0xff]  ;;  %v334_v21 = vpack.c.bf16 %v86_v16, %v85_v15  ;;  %v105_v22 = vld [vmem:[%s561_s3 + $0xc0] sm:$0xff]  ;;  %v106_v23 = vld [vmem:[%s561_s3 + $0xc8] sm:$0xff]  ;;  %v336_v24 = vpack.c.bf16 %v104_v18, %v103_v17 }
  0x15   :  { %v338_v25 = vpack.c.bf16 %v88_v20, %v87_v19  ;;  %v41_v26 = vld [vmem:[%s558_s0] sm:$0xff]  ;;  %v45_v27 = vstv %s441_s17  ;;  %v52_v28 = vstv %s452_s24  ;;  %v340_v29 = vpack.c.bf16 %v106_v23, %v105_v22  ;;  %v48_v32 = vld [vmem:[%s558_s0 + $0x8] sm:$0xff] }
  0x16   :  { %v42_v30 = vunpack.c.l.bf16 %v41_v26  ;;  %v43_v31 = vunpack.c.h.bf16 %v41_v26  ;;  %v57_v33 = vld [vmem:[%s558_s0 + $0x10] sm:$0xff]  ;;  %v61_v34 = vstv %s457_s27  ;;  %v66_v35 = vld [vmem:[%s558_s0 + $0x18] sm:$0xff]  ;;  %v49_v36 = vunpack.c.l.bf16 %v48_v32  ;;  %v89_v40 = vld [vmem:[%s561_s3 + $0x40] sm:$0xff] }
  0x17   :  { %331 = vmatpush3.bf16.msra.mxu0 %v330_v13  ;;  %v50_v37 = vunpack.c.h.bf16 %v48_v32  ;;  %v58_v38 = vunpack.c.l.bf16 %v57_v33  ;;  %v59_v39 = vunpack.c.h.bf16 %v57_v33  ;;  %v90_v41 = vld [vmem:[%s561_s3 + $0x48] sm:$0xff]  ;;  %v68_v44 = vunpack.c.h.bf16 %v66_v35  ;;  %v107_v46 = vld [vmem:[%s561_s3 + $0xd0] sm:$0xff]  ;;  %v108_v47 = vld [vmem:[%s561_s3 + $0xd8] sm:$0xff] }
  0x18   :  { %333 = vmatprep.subr.bf16.mxu0 %v332_v14  ;;  %v46_v42 = vmul.f32 %v45_v27, %v42_v30  ;;  %v47_v43 = vmul.f32 %v45_v27, %v43_v31  ;;  %v70_v45 = vstv %s465_s9  ;;  %v53_v48 = vmul.f32 %v52_v28, %v49_v36  ;;  %v91_v58 = vld [vmem:[%s561_s3 + $0x50] sm:$0xff]  ;;  %v92_v59 = vld [vmem:[%s561_s3 + $0x58] sm:$0xff]  ;;  %v109_v60 = vld [vmem:[%s561_s3 + $0xe0] sm:$0xff] }
  0x19   :  { %v54_v49 = vmul.f32 %v52_v28, %v50_v37  ;;  %v63_v50 = vmul.f32 %v61_v34, %v59_v39  ;;  %v62_v51 = vmul.f32 %v61_v34, %v58_v38  ;;  %v67_v52 = vunpack.c.l.bf16 %v66_v35  ;;  %v110_v61 = vld [vmem:[%s561_s3 + $0xe8] sm:$0xff]  ;;  %v93_v5 = vld [vmem:[%s561_s3 + $0x60] sm:$0xff]  ;;  %v111_v7 = vld [vmem:[%s561_s3 + $0xf0] sm:$0xff] }
  0x1a   :  { %v342_v53 = vpack.c.bf16 %v90_v41, %v89_v40  ;;  %v55_v54 = vadd.f32 %v53_v48, %v46_v42  ;;  %v72_v56 = vmul.f32 %v70_v45, %v68_v44  ;;  %v344_v57 = vpack.c.bf16 %v108_v47, %v107_v46  ;;  %v94_v6 = vld [vmem:[%s561_s3 + $0x68] sm:$0xff]  ;;  %v112_v8 = vld [vmem:[%s561_s3 + $0xf8] sm:$0xff]  ;;  %v95_v14 = vld [vmem:[%s561_s3 + $0x70] sm:$0xff] }
  0x1b   :  { %335 = vmatpush3.bf16.msra.mxu0 %v334_v21  ;;  %v56_v55 = vadd.f32 %v54_v49, %v47_v43  ;;  %v71_v0 = vmul.f32 %v70_v45, %v67_v52  ;;  %v346_v2 = vpack.c.bf16 %v92_v59, %v91_v58  ;;  %v348_v4 = vpack.c.bf16 %v110_v61, %v109_v60  ;;  %v96_v15 = vld [vmem:[%s561_s3 + $0x78] sm:$0xff]  ;;  %v280_v22 = vld [vmem:[%s562_s4] ss:$0 sm:$0xff] }
  0x1c   :  { %337 = vmatprep.subr.bf16.mxu0 %v336_v24  ;;  %v64_v63 = vadd.f32 %v62_v51, %v55_v54  ;;  %v350_v11 = vpack.c.bf16 %v94_v6, %v93_v5  ;;  %v352_v13 = vpack.c.bf16 %v112_v8, %v111_v7  ;;  %v354_v17 = vpack.c.bf16 %v96_v15, %v95_v14  ;;  %v191_v26 = vld [vmem:[%s563_s5] sm:$0x1] }
  0x1d   :  { %v65_v62 = vadd.f32 %v63_v50, %v56_v55  ;;  %v378_v19 = vmov 0.0   ;;  %v193_v27 = vstv %s564_s6 }
  0x1e   :  { %v73_v10 = vadd.f32 %v71_v0, %v64_v63  ;;  %319 = vmatprep.subr.mxu1 %v378_v19  ;;  %321 = vmatprep.mubr.msk.f32.mxu1 %vm379_vm0, %v378_v19 }
  0x1f   :  { %339 = vmatpush3.bf16.msra.mxu0 %v338_v25  ;;  %v74_v3 = vadd.f32 %v72_v56, %v65_v62 }
  0x20   :  { %341 = vmatprep.subr.bf16.mxu0 %v340_v29  ;;  %v77_v16 = vadd.f32 %v76_v1, %v73_v10 }
  0x21   :  { %v78_v9 = vadd.f32 %v76_v1, %v74_v3 }
  0x22   :  { %v79_v18 = vmax.f32 %v77_v16, 0.0 }
  0x23   :  { %343 = vmatpush3.bf16.msra.mxu0 %v342_v53  ;;  %v80_v12 = vmax.f32 %v78_v9, 0.0 }
  0x24   :  { %345 = vmatprep.subr.bf16.mxu0 %v344_v57 }
  0x25   :  { %184 = vmatprep.mubr.f32.mxu0 %v80_v12 }
  0x27   :  { %347 = vmatpush3.bf16.msra.mxu0 %v346_v2 }
  0x28   :  { %349 = vmatprep.subr.bf16.mxu0 %v348_v4 }
  0x2b   :  { %351 = vmatpush3.bf16.msra.mxu0 %v350_v11 }
  0x2c   :  { %353 = vmatprep.subr.bf16.mxu0 %v352_v13 }
  0x2f   :  { %355 = vmatpush3.bf16.msra.mxu0 %v354_v17 }
  0x32   :  { %185 = vmatmul.mubr.f32.vlgmr.msra.gmra.mrb[0].mxu0 %v79_v18 }
 0x105   :  { %v314_v20 = vpop.f32.mrb[0].mxu0 }
 0x106   :  { %v315_v21 = vpop.f32.mrb[1].mxu0 }
 0x107   :  { %v316_v23 = vadd.f32 %v315_v21, %v314_v20 }
 0x109   :  { %v187_v24 = vadd.f32 %v316_v23, %v280_v22 }
 0x10b   :  { %v190_v25 = vmax.f32 %v187_v24, 0.0 }
 0x10d   :  { %320 = vmatpush3.xpose.msra.mxu1 %v190_v25 }
 0x110   :  { %322 = vmatmul.mubr.f32.vlgmr.msra.gmra.mrb[0].mxu1 %v191_v26 }
 0x1e3   :  { %v260_v28 = vpop.f32.mrb[0].mxu1 }
 0x1e4   :  { %v261_v29 = vadd.f32 %v260_v28, %v193_v27  ;;  %v323_v30 = vpop.f32.mrb[1].mxu1 }
 0x1e6   :  { %v281_v31 = vmul.f32 -1.442695, %v261_v29 }
 0x1e8   :  { %359 = vpow2.f32 %v281_v31 }
 0x1f2   :  { %v360_v32 = vpop.eup %359 }
 0x1f3   :  { %v267_v33 = vadd.f32 1.0, %v360_v32 }
 0x1f5   :  { %361 = vrcp.f32 %v267_v33 }
 0x1ff   :  { %v362_v34 = vpop.eup %361 }
 0x200   :  { %271 = vst.msk [vmem:[%s565_s7] sm:$0x1] %vm270_vm1, %v362_v34 }
 0x201   :  { %276 = vsyncpa [#allocation5], 1 }

</bundles_post_ra>
